<compile_context>
chip_gen: v5e
topology: v5e:2x2
jax: 0.10.0
libtpu: 0.0.40
codegen_flags: <defaults>
</compile_context>

<pallas_src>
import functools

import jax
import jax.numpy as jnp
from jax.experimental import pallas as pl
from jax.experimental.pallas import tpu as pltpu


def _round_up(x: int, m: int) -> int:
    return (x + m - 1) // m * m


def _querynet_kernel(x_ref, w1_ref, b1_ref, w2_ref, b2_ref, o_ref):
    """One row-tile of the fused 2-layer MLP.

    x_ref  : (TILE_M, IN)       streamed per grid step (f32 or bf16)
    w1_ref : (IN, INTER_P)      relu already applied, resident in VMEM
    b1_ref : (1, INTER_P)       resident in VMEM
    w2_ref : (1, INTER_P)       relu already applied (transposed), resident
    b2_ref : (1, 1)             resident in VMEM
    o_ref  : (TILE_M, 1)        output block
    """
    # ---- Layer 1: X @ relu(W1) + b1  (MXU, f32 accumulate; K is tiny so f32
    # operands cost nothing and keep full precision).
    x = x_ref[...].astype(jnp.float32)
    z = jnp.dot(x, w1_ref[...], preferred_element_type=jnp.float32) + b1_ref[...]

    # ---- sigmoid via tanh: one EUP push per element (vs exp + reciprocal).
    h = 0.5 * (jnp.tanh(0.5 * z) + 1.0)                       # (TILE_M, INTER_P) f32

    # ---- Layer 2: hidden @ relu(W2) + b2.  RHS is 1-wide, so skip the MXU:
    # VPU broadcast-multiply + XLU lane reduction.
    row_sum = jnp.sum(h * w2_ref[...], axis=-1, keepdims=True)  # (TILE_M, 1) f32
    o_ref[...] = (row_sum + b2_ref[...]).astype(o_ref.dtype)


@functools.partial(jax.jit, static_argnames=("tile_m",))
def querynet_forward(x, w1, b1, w2, b2, *, tile_m: int = 4096):
    """Pallas TPU forward pass equivalent to PyTorch QueryNet.forward."""
    x = jnp.asarray(x)
    if x.dtype not in (jnp.bfloat16, jnp.float32):
        x = x.astype(jnp.float32)
    n, in_dim = x.shape
    inter = w1.shape[1]
    out_dtype = jnp.float32 if x.dtype == jnp.float32 else x.dtype

    # Grid-invariant weight prep, hoisted out of the kernel: relu + zero-pad
    # the (tiny) parameters once to a full 128-lane hidden width.  Padding is
    # exact: relu(0)=0 kills the padded W1 columns / W2 rows, and the padded
    # hidden columns (sigmoid(0)=0.5) are multiplied by relu-padded zeros.
    inter_p = _round_up(max(inter, 128), 128)
    w1p = jnp.zeros((in_dim, inter_p), jnp.float32).at[:, :inter].set(
        jnp.maximum(jnp.asarray(w1, jnp.float32), 0.0))
    b1p = jnp.zeros((1, inter_p), jnp.float32).at[0, :inter].set(
        jnp.reshape(jnp.asarray(b1, jnp.float32), (-1,)))
    w2p = jnp.zeros((1, inter_p), jnp.float32).at[0, :inter].set(
        jnp.maximum(jnp.reshape(jnp.asarray(w2, jnp.float32), (-1,)), 0.0))
    b2p = jnp.reshape(jnp.asarray(b2, jnp.float32), (1, 1))

    # Row tile: as large as VMEM comfortably allows (lane-padded X/out blocks
    # cost ~2.5 KiB/row incl. double-buffering -> cap at 4096), multiple of 8
    # sublanes, and small enough that the grid has >= 2 steps when N allows it
    # so both v7x TensorCores get work.
    max_tile = 4096
    two_way = _round_up(pl.cdiv(n, 2), 8)           # <= half of N (rounded up)
    tile_m = int(max(8, min(tile_m, max_tile, two_way)))
    grid = (pl.cdiv(n, tile_m),)

    grid_spec = pltpu.PrefetchScalarGridSpec(
        num_scalar_prefetch=0,
        grid=grid,
        in_specs=[
            pl.BlockSpec((tile_m, in_dim), lambda i: (i, 0)),    # X: streamed
            pl.BlockSpec((in_dim, inter_p), lambda i: (0, 0)),   # relu(W1): resident
            pl.BlockSpec((1, inter_p), lambda i: (0, 0)),        # b1: resident
            pl.BlockSpec((1, inter_p), lambda i: (0, 0)),        # relu(W2)^T: resident
            pl.BlockSpec((1, 1), lambda i: (0, 0)),              # b2: resident
        ],
        out_specs=pl.BlockSpec((tile_m, 1), lambda i: (i, 0)),
    )

    return pl.pallas_call(
        _querynet_kernel,
        out_shape=jax.ShapeDtypeStruct((n, 1), out_dtype),
        grid_spec=grid_spec,
        compiler_params=pltpu.CompilerParams(
            dimension_semantics=("parallel",),
        ),
    )(x, w1p, b1p, w2p, b2p)


if __name__ == "__main__":
    key = jax.random.PRNGKey(0)
    kx, k1, k2, k3, k4 = jax.random.split(key, 5)

    # Shapes consistent with QueryNet defaults (input_size=2, inter_dim=64).
    N, INPUT_SIZE, INTER_DIM = 512, 2, 64
    x = jax.random.normal(kx, (N, INPUT_SIZE), dtype=jnp.float32)
    # QueryNet initializes parameters with torch.rand -> U[0, 1).
    w1 = jax.random.uniform(k1, (INPUT_SIZE, INTER_DIM), dtype=jnp.float32)
    w2 = jax.random.uniform(k2, (INTER_DIM, 1), dtype=jnp.float32)
    b1 = jax.random.uniform(k3, (INTER_DIM,), dtype=jnp.float32)
    b2 = jax.random.uniform(k4, (1,), dtype=jnp.float32)

    out = querynet_forward(x, w1, b1, w2, b2)
    out = jax.block_until_ready(out)

    # Pure-JAX float32 reference of the PyTorch forward pass.
    ref = jax.nn.sigmoid(x @ jnp.maximum(w1, 0.0) + b1) @ jnp.maximum(w2, 0.0) + b2

    assert out.shape == (N, 1), out.shape
    # Full f32 path + tanh-form sigmoid -> tight tolerance.
    if not jnp.allclose(out, ref, rtol=1e-4, atol=1e-4):
        max_err = float(jnp.max(jnp.abs(out - ref)))
        raise AssertionError(f"QueryNet Pallas kernel mismatch: max abs err = {max_err}")
    print("KERNEL_OK")
</pallas_src>

<mosaic_0001>
module attributes {stable_mosaic.version = 11 : i64} {
  func.func @_querynet_kernel(%arg0: i32, %arg1: memref<256x2xf32, #tpu.memory_space<vmem>>, %arg2: memref<2x128xf32, #tpu.memory_space<vmem>>, %arg3: memref<1x128xf32, #tpu.memory_space<vmem>>, %arg4: memref<1x128xf32, #tpu.memory_space<vmem>>, %arg5: memref<1x1xf32, #tpu.memory_space<vmem>>, %arg6: memref<256x1xf32, #tpu.memory_space<vmem>>) attributes {dimension_semantics = [#tpu.dimension_semantics<parallel>], iteration_bounds = array<i64: 2>, scalar_prefetch = 0 : i64, scratch_operands = 0 : i64, tpu.core_type = #tpu.core_type<tc>, window_params = [{transform_indices = @transform_0, window_bounds = array<i64: 256, 2>}, {pipeline_mode = #tpu.pipeline_mode<synchronous>, transform_indices = @transform_1, window_bounds = array<i64: 2, 128>}, {pipeline_mode = #tpu.pipeline_mode<synchronous>, transform_indices = @transform_2, window_bounds = array<i64: 1, 128>}, {pipeline_mode = #tpu.pipeline_mode<synchronous>, transform_indices = @transform_3, window_bounds = array<i64: 1, 128>}, {pipeline_mode = #tpu.pipeline_mode<synchronous>, transform_indices = @transform_4, window_bounds = array<i64: 1, 1>}, {transform_indices = @transform_5, window_bounds = array<i64: 256, 1>}]} {
    %c0 = arith.constant 0 : index
    %c0_0 = arith.constant 0 : index
    %0 = vector.load %arg1[%c0, %c0_0] : memref<256x2xf32, #tpu.memory_space<vmem>>, vector<256x2xf32>
    %c0_1 = arith.constant 0 : index
    %c0_2 = arith.constant 0 : index
    %1 = vector.load %arg2[%c0_1, %c0_2] : memref<2x128xf32, #tpu.memory_space<vmem>>, vector<2x128xf32>
    %cst = arith.constant dense<0.000000e+00> : vector<256x128xf32>
    %2 = tpu.matmul %0, %1, %cst {dimension_numbers = #tpu.dot_dimension_numbers<[1], [0], [0], [1], [0, 0, 1, 1], [], []>} : vector<256x2xf32>, vector<2x128xf32>, vector<256x128xf32> -> vector<256x128xf32>
    %c0_3 = arith.constant 0 : index
    %c0_4 = arith.constant 0 : index
    %3 = vector.load %arg3[%c0_3, %c0_4] : memref<1x128xf32, #tpu.memory_space<vmem>>, vector<1x128xf32>
    %4 = vector.broadcast %3 : vector<1x128xf32> to vector<256x128xf32>
    %5 = arith.addf %2, %4 : vector<256x128xf32>
    %cst_5 = arith.constant 5.000000e-01 : f32
    %6 = vector.broadcast %cst_5 : f32 to vector<256x128xf32>
    %7 = arith.mulf %6, %5 : vector<256x128xf32>
    %8 = math.tanh %7 : vector<256x128xf32>
    %cst_6 = arith.constant 1.000000e+00 : f32
    %9 = vector.broadcast %cst_6 : f32 to vector<256x128xf32>
    %10 = arith.addf %8, %9 : vector<256x128xf32>
    %cst_7 = arith.constant 5.000000e-01 : f32
    %11 = vector.broadcast %cst_7 : f32 to vector<256x128xf32>
    %12 = arith.mulf %11, %10 : vector<256x128xf32>
    %c0_8 = arith.constant 0 : index
    %c0_9 = arith.constant 0 : index
    %13 = vector.load %arg4[%c0_8, %c0_9] : memref<1x128xf32, #tpu.memory_space<vmem>>, vector<1x128xf32>
    %14 = vector.broadcast %13 : vector<1x128xf32> to vector<256x128xf32>
    %15 = arith.mulf %12, %14 : vector<256x128xf32>
    %cst_10 = arith.constant dense<0.000000e+00> : vector<256xf32>
    %16 = vector.multi_reduction <add>, %15, %cst_10 [1] : vector<256x128xf32> to vector<256xf32>
    %17 = vector.shape_cast %16 : vector<256xf32> to vector<256x1xf32>
    %c0_11 = arith.constant 0 : index
    %c0_12 = arith.constant 0 : index
    %18 = vector.load %arg5[%c0_11, %c0_12] : memref<1x1xf32, #tpu.memory_space<vmem>>, vector<1x1xf32>
    %19 = vector.broadcast %18 : vector<1x1xf32> to vector<256x1xf32>
    %20 = arith.addf %17, %19 : vector<256x1xf32>
    %c0_13 = arith.constant 0 : index
    %c0_14 = arith.constant 0 : index
    %21 = vector.load %arg6[%c0_13, %c0_14] : memref<256x1xf32, #tpu.memory_space<vmem>>, vector<256x1xf32>
    tpu.vector_store %arg6[%c0_13, %c0_14], %20 {strides = array<i32>} : memref<256x1xf32, #tpu.memory_space<vmem>>, vector<256x1xf32>,
    return
  }
  func.func @transform_0(%arg0: i32) -> (i32, i32) {
    %c0_i32 = arith.constant 0 : i32
    %c0_i32_0 = arith.constant 0 : i32
    return %arg0, %c0_i32 : i32, i32
  }
  func.func @transform_1(%arg0: i32) -> (i32, i32) {
    %c0_i32 = arith.constant 0 : i32
    %c0_i32_0 = arith.constant 0 : i32
    %c0_i32_1 = arith.constant 0 : i32
    return %c0_i32, %c0_i32_0 : i32, i32
  }
  func.func @transform_2(%arg0: i32) -> (i32, i32) {
    %c0_i32 = arith.constant 0 : i32
    %c0_i32_0 = arith.constant 0 : i32
    %c0_i32_1 = arith.constant 0 : i32
    return %c0_i32, %c0_i32_0 : i32, i32
  }
  func.func @transform_3(%arg0: i32) -> (i32, i32) {
    %c0_i32 = arith.constant 0 : i32
    %c0_i32_0 = arith.constant 0 : i32
    %c0_i32_1 = arith.constant 0 : i32
    return %c0_i32, %c0_i32_0 : i32, i32
  }
  func.func @transform_4(%arg0: i32) -> (i32, i32) {
    %c0_i32 = arith.constant 0 : i32
    %c0_i32_0 = arith.constant 0 : i32
    %c0_i32_1 = arith.constant 0 : i32
    return %c0_i32, %c0_i32_0 : i32, i32
  }
  func.func @transform_5(%arg0: i32) -> (i32, i32) {
    %c0_i32 = arith.constant 0 : i32
    %c0_i32_0 = arith.constant 0 : i32
    return %arg0, %c0_i32 : i32, i32
  }
}

</mosaic_0001>

<bundles_post_ra>
// kernel: querynet_forward.1
= control target key start
LH: loop header
LB: loop body
LE: loop exit
PB: predicated region body
PF: predicated region fallthrough
CT: control target
= control target key end

     0   :  { %s997_s20 = smov 0   ;;  %s1267_s0 = inlined_call_operand.vmem [shape: f32[512,2], index: 0, kind: input, shape index: {}]   ;;  %s1268_s1 = inlined_call_operand.vmem [shape: f32[2,128], index: 1, kind: input, shape index: {}]   ;;  %s1269_s2 = inlined_call_operand.vmem [shape: f32[1,128], index: 2, kind: input, shape index: {}]   ;;  %s1270_s3 = inlined_call_operand.vmem [shape: f32[1,128], index: 3, kind: input, shape index: {}]   ;;  %s1271_s4 = inlined_call_operand.<no memory space> [shape: f32[1,1], index: 4, kind: input, shape index: {}]   ;;  %s1272_s5 = inlined_call_operand.vmem [shape: f32[512,1], index: 5, kind: output, shape index: {}]  }
   0x1   :  { %v10_v0 = vstv %s1271_s4 }
   0x2   :  { %11 = vst [vmem:[#allocation2] sm:$0x1] %v10_v0 }
   0x3 LB: > { %s834_s21 = sadd.s32 4294967295, %s962_s20   ;;  %p838_p0 = scmp.ge.s32.totalorder %s962_s20, 1  ;;  %s962_s20 = sphi %s997_s20, %s17_s20  }
   0x4   : > { %p190_p1 = scmp.lt.s32.totalorder %s962_s20, 3 }
   0x6   : > { %p191_p2 = pnand %p838_p0, %p190_p1 }
   0x7   : > { %s839_s4 = sshll.u32 (!%p191_p2), %s834_s21, 5 }
   0x8   : > { %194 = sbr.rel (%p191_p2) target bundleno = 367 (0x16f), region = 40  ;;  %p219_p3 = scmp.lt.s32.totalorder (!%p191_p2), %s839_s4, 63 }
   0xd   : > { %v262_v1 = vld [vmem:[%s1268_s1] sm:$0x3]  ;;  %vm364_vm0 = vcmask 1041408   ;;  %s1274_s4 = smov (!%p219_p3, %s839_s4), 63  ;;  %vm267_vm1 = vcmask 15360   ;;  %vm745_vm2 = vcmask 7168  }
   0xe   : > { %843 = vmatpush.msk.msra.mxu0 %vm364_vm0, %v262_v1  ;;  %879 = vmatpush.msk.msra.mxu2 %vm364_vm0, %v262_v1  ;;  %s840_s24 = sshll.u32 %s1274_s4, 3  ;;  %v1085_v34 = vld [vmem:[%s1269_s2] ss:$0 sm:$0xff] }
   0xf   : > { %880 = vmatpush.msk.msra.mxu3 %vm364_vm0, %v262_v1  ;;  %878 = vmatpush.msk.msra.mxu1 %vm364_vm0, %v262_v1  ;;  %s1016_s27 = scalar_lea.vmem %s1267_s0, %s840_s24  ;;  %v1095_v54 = vld [vmem:[%s1270_s3] ss:$0 sm:$0xff]  ;;  %s1166_s9 = scalar_lea.vmem %s1272_s5, %s840_s24 }
  0x10   : > { %v230_v2 = vld [vmem:[%s1016_s27] sm:$0xff]  ;;  %v247_v6 = vld [vmem:[%s1016_s27 + $0x88] sm:$0xff]  ;;  %v232_v10 = vld [vmem:[%s1016_s27 + $0x10] sm:$0xff] }
  0x11   : > { %v246_v3 = vld [vmem:[%s1016_s27 + $0x80] sm:$0xff]  ;;  %844 = vmatmul.msk.f32.vlgmr.msra.gmra.mxu0 %vm267_vm1, %v230_v2  ;;  %v231_v7 = vld [vmem:[%s1016_s27 + $0x8] sm:$0xff]  ;;  %v248_v11 = vld [vmem:[%s1016_s27 + $0x90] sm:$0xff] }
  0x12   : > { %v254_v4 = vld [vmem:[%s1016_s27 + $0xc0] sm:$0xff]  ;;  %860 = vmatmul.msk.f32.vlgmr.msra.gmra.mxu2 %vm267_vm1, %v246_v3  ;;  %v255_v8 = vld [vmem:[%s1016_s27 + $0xc8] sm:$0xff]  ;;  %v256_v12 = vld [vmem:[%s1016_s27 + $0xd0] sm:$0xff] }
  0x13   : > { %v238_v5 = vld [vmem:[%s1016_s27 + $0x40] sm:$0xff]  ;;  %868 = vmatmul.msk.f32.vlgmr.msra.gmra.mxu3 %vm267_vm1, %v254_v4  ;;  %v239_v9 = vld [vmem:[%s1016_s27 + $0x48] sm:$0xff]  ;;  %v240_v13 = vld [vmem:[%s1016_s27 + $0x50] sm:$0xff] }
  0x14   : > { %852 = vmatmul.msk.f32.vlgmr.msra.gmra.mxu1 %vm267_vm1, %v238_v5  ;;  %v233_v14 = vld [vmem:[%s1016_s27 + $0x18] sm:$0xff]  ;;  %v234_v18 = vld [vmem:[%s1016_s27 + $0x20] sm:$0xff]  ;;  %v251_v22 = vld [vmem:[%s1016_s27 + $0xa8] sm:$0xff] }
  0x15   : > { %v249_v15 = vld [vmem:[%s1016_s27 + $0x98] sm:$0xff]  ;;  %v250_v19 = vld [vmem:[%s1016_s27 + $0xa0] sm:$0xff]  ;;  %v235_v23 = vld [vmem:[%s1016_s27 + $0x28] sm:$0xff] }
  0x16   : > { %v241_v16 = vld [vmem:[%s1016_s27 + $0x58] sm:$0xff]  ;;  %v242_v20 = vld [vmem:[%s1016_s27 + $0x60] sm:$0xff]  ;;  %v243_v24 = vld [vmem:[%s1016_s27 + $0x68] sm:$0xff] }
  0x17   : > { %v257_v17 = vld [vmem:[%s1016_s27 + $0xd8] sm:$0xff]  ;;  %v258_v21 = vld [vmem:[%s1016_s27 + $0xe0] sm:$0xff]  ;;  %v259_v25 = vld [vmem:[%s1016_s27 + $0xe8] sm:$0xff] }
  0x18   : > { %v252_v26 = vld [vmem:[%s1016_s27 + $0xb0] sm:$0xff]  ;;  %v253_v30 = vld [vmem:[%s1016_s27 + $0xb8] sm:$0xff] }
  0x19   : > { %845 = vmatmul.msk.f32.gmra.mxu0 %vm267_vm1, %v231_v7  ;;  %v236_v27 = vld [vmem:[%s1016_s27 + $0x30] sm:$0xff]  ;;  %v237_v31 = vld [vmem:[%s1016_s27 + $0x38] sm:$0xff] }
  0x1a   : > { %861 = vmatmul.msk.f32.gmra.mxu2 %vm267_vm1, %v247_v6  ;;  %v244_v28 = vld [vmem:[%s1016_s27 + $0x70] sm:$0xff]  ;;  %v245_v32 = vld [vmem:[%s1016_s27 + $0x78] sm:$0xff] }
  0x1b   : > { %869 = vmatmul.msk.f32.gmra.mxu3 %vm267_vm1, %v255_v8  ;;  %v260_v29 = vld [vmem:[%s1016_s27 + $0xf0] sm:$0xff]  ;;  %v261_v33 = vld [vmem:[%s1016_s27 + $0xf8] sm:$0xff] }
  0x1c   : > { %853 = vmatmul.msk.f32.gmra.mxu1 %vm267_vm1, %v239_v9 }
  0x21   : > { %846 = vmatmul.msk.f32.gmra.mxu0 %vm267_vm1, %v232_v10 }
  0x22   : > { %862 = vmatmul.msk.f32.gmra.mxu2 %vm267_vm1, %v248_v11 }
  0x23   : > { %870 = vmatmul.msk.f32.gmra.mxu3 %vm267_vm1, %v256_v12 }
  0x24   : > { %854 = vmatmul.msk.f32.gmra.mxu1 %vm267_vm1, %v240_v13 }
  0x29   : > { %847 = vmatmul.msk.f32.gmra.mxu0 %vm267_vm1, %v233_v14 }
  0x2a   : > { %863 = vmatmul.msk.f32.gmra.mxu2 %vm267_vm1, %v249_v15 }
  0x2b   : > { %871 = vmatmul.msk.f32.gmra.mxu3 %vm267_vm1, %v257_v17 }
  0x2c   : > { %855 = vmatmul.msk.f32.gmra.mxu1 %vm267_vm1, %v241_v16 }
  0x31   : > { %848 = vmatmul.msk.f32.gmra.mxu0 %vm267_vm1, %v234_v18 }
  0x32   : > { %864 = vmatmul.msk.f32.gmra.mxu2 %vm267_vm1, %v250_v19 }
  0x33   : > { %872 = vmatmul.msk.f32.gmra.mxu3 %vm267_vm1, %v258_v21 }
  0x34   : > { %856 = vmatmul.msk.f32.gmra.mxu1 %vm267_vm1, %v242_v20 }
  0x39   : > { %849 = vmatmul.msk.f32.gmra.mxu0 %vm267_vm1, %v235_v23 }
  0x3a   : > { %865 = vmatmul.msk.f32.gmra.mxu2 %vm267_vm1, %v251_v22 }
  0x3b   : > { %873 = vmatmul.msk.f32.gmra.mxu3 %vm267_vm1, %v259_v25 }
  0x3c   : > { %857 = vmatmul.msk.f32.gmra.mxu1 %vm267_vm1, %v243_v24 }
  0x41   : > { %850 = vmatmul.msk.f32.gmra.mxu0 %vm267_vm1, %v236_v27 }
  0x42   : > { %866 = vmatmul.msk.f32.gmra.mxu2 %vm267_vm1, %v252_v26 }
  0x43   : > { %874 = vmatmul.msk.f32.gmra.mxu3 %vm267_vm1, %v260_v29 }
  0x44   : > { %858 = vmatmul.msk.f32.gmra.mxu1 %vm267_vm1, %v244_v28 }
  0x49   : > { %851 = vmatmul.msk.f32.gmra.mxu0 %vm267_vm1, %v237_v31 }
  0x4a   : > { %867 = vmatmul.msk.f32.gmra.mxu2 %vm267_vm1, %v253_v30 }
  0x4b   : > { %875 = vmatmul.msk.f32.gmra.mxu3 %vm267_vm1, %v261_v33 }
  0x4c   : > { %859 = vmatmul.msk.f32.gmra.mxu1 %vm267_vm1, %v245_v32 }
  0x8e   : > { %v385_v35 = vpop.f32.mrf.mxu0 }
  0x8f   : > { %v386_v36 = vadd.f32 %v1085_v34, %v385_v35 }
  0x91   : > { %v409_v37 = vpop.f32.mrf.mxu1  ;;  %v481_v39 = vmul.f32 0.5, %v386_v36 }
  0x92   : > { %v410_v38 = vadd.f32 %v1085_v34, %v409_v37 }
  0x93   : > { %892 = vtanh.f32 %v481_v39 }
  0x94   : > { %v489_v40 = vmul.f32 0.5, %v410_v38 }
  0x95   : > { %v433_v41 = vpop.f32.mrf.mxu2 }
  0x96   : > { %894 = vtanh.f32 %v489_v40  ;;  %v434_v42 = vadd.f32 %v1085_v34, %v433_v41  ;;  %v457_v43 = vpop.f32.mrf.mxu3  ;;  %v388_v45 = vpop.f32.mrf.mxu0 }
  0x97   : > { %v458_v44 = vadd.f32 %v1085_v34, %v457_v43  ;;  %v389_v47 = vadd.f32 %v1085_v34, %v388_v45 }
  0x98   : > { %v497_v46 = vmul.f32 0.5, %v434_v42 }
  0x99   : > { %v412_v48 = vpop.f32.mrf.mxu1  ;;  %v505_v49 = vmul.f32 0.5, %v458_v44  ;;  %v893_v50 = vpop.eup %892  ;;  %v482_v51 = vmul.f32 0.5, %v389_v47 }
  0x9a   : > { %896 = vtanh.f32 %v497_v46  ;;  %v545_v53 = vadd.f32 1.0, %v893_v50  ;;  %v413_v56 = vadd.f32 %v1085_v34, %v412_v48 }
  0x9b   : > { %898 = vtanh.f32 %v505_v49 }
  0x9c   : > { %v895_v52 = vpop.eup %894  ;;  %900 = vtanh.f32 %v482_v51  ;;  %v577_v58 = vmul.f32 0.5, %v545_v53  ;;  %v490_v7 = vmul.f32 0.5, %v413_v56 }
  0x9d   : > { %v553_v55 = vadd.f32 1.0, %v895_v52  ;;  %v436_v57 = vpop.f32.mrf.mxu2 }
  0x9e   : > { %v437_v59 = vadd.f32 %v1085_v34, %v436_v57  ;;  %v460_v60 = vpop.f32.mrf.mxu3  ;;  %v613_v63 = vmul.f32 %v1095_v54, %v577_v58  ;;  %v391_v0 = vpop.f32.mrf.mxu0 }
  0x9f   : > { %v585_v61 = vmul.f32 0.5, %v553_v55  ;;  %v461_v62 = vadd.f32 %v1085_v34, %v460_v60  ;;  %v392_v3 = vadd.f32 %v1085_v34, %v391_v0 }
  0xa0   : > { %v897_v1 = vpop.eup %896  ;;  %v498_v2 = vmul.f32 0.5, %v437_v59  ;;  %645 = vadd.xlane.f32.xlu0 %v613_v63 }
  0xa1   : > { %v415_v4 = vpop.f32.mrf.mxu1  ;;  %v621_v5 = vmul.f32 %v1095_v54, %v585_v61  ;;  %v899_v6 = vpop.eup %898  ;;  %v506_v8 = vmul.f32 0.5, %v461_v62  ;;  %v561_v9 = vadd.f32 1.0, %v897_v1  ;;  %v483_v11 = vmul.f32 0.5, %v392_v3 }
  0xa2   : > { %v569_v10 = vadd.f32 1.0, %v899_v6  ;;  %902 = vtanh.f32 %v498_v2  ;;  %v416_v12 = vadd.f32 %v1085_v34, %v415_v4  ;;  %v901_v13 = vpop.eup %900 }
  0xa3   : > { %661 = vadd.xlane.f32.xlu2 %v621_v5  ;;  %904 = vtanh.f32 %v506_v8  ;;  %v593_v14 = vmul.f32 0.5, %v561_v9  ;;  %v546_v18 = vadd.f32 1.0, %v901_v13 }
  0xa4   : > { %906 = vtanh.f32 %v483_v11  ;;  %v601_v15 = vmul.f32 0.5, %v569_v10  ;;  %v491_v19 = vmul.f32 0.5, %v416_v12 }
  0xa5   : > { %v629_v16 = vmul.f32 %v1095_v54, %v593_v14  ;;  %v439_v17 = vpop.f32.mrf.mxu2  ;;  %908 = vtanh.f32 %v490_v7  ;;  %v578_v36 = vmul.f32 0.5, %v546_v18 }
  0xa6   : > { %v463_v20 = vpop.f32.mrf.mxu3  ;;  %v440_v21 = vadd.f32 %v1085_v34, %v439_v17  ;;  %v637_v23 = vmul.f32 %v1095_v54, %v601_v15  ;;  %v394_v24 = vpop.f32.mrf.mxu0  ;;  %910 = vtanh.f32 %v491_v19 }
  0xa7   : > { %v464_v22 = vadd.f32 %v1085_v34, %v463_v20  ;;  %677 = vadd.xlane.f32.xlu1 %v629_v16  ;;  %v395_v35 = vadd.f32 %v1085_v34, %v394_v24  ;;  %v614_v49 = vmul.f32 %v1095_v54, %v578_v36 }
  0xa8   : > { %v903_v25 = vpop.eup %902  ;;  %v499_v27 = vmul.f32 0.5, %v440_v21  ;;  %693 = vadd.xlane.f32.xlu0 %v637_v23 }
  0xa9   : > { %v418_v26 = vpop.f32.mrf.mxu1  ;;  %v905_v28 = vpop.eup %904  ;;  %v562_v29 = vadd.f32 1.0, %v903_v25  ;;  %v507_v30 = vmul.f32 0.5, %v464_v22  ;;  %v484_v44 = vmul.f32 0.5, %v395_v35 }
  0xaa   : > { %v419_v31 = vadd.f32 %v1085_v34, %v418_v26  ;;  %v907_v32 = vpop.eup %906  ;;  %v570_v33 = vadd.f32 1.0, %v905_v28 }
  0xab   : > { %v547_v37 = vadd.f32 1.0, %v907_v32  ;;  %912 = vtanh.f32 %v507_v30  ;;  %v594_v39 = vmul.f32 0.5, %v562_v29  ;;  %v909_v40 = vpop.eup %908 }
  0xac   : > { %v492_v38 = vmul.f32 0.5, %v419_v31  ;;  %914 = vtanh.f32 %v499_v27  ;;  %v602_v41 = vmul.f32 0.5, %v570_v33  ;;  %v554_v48 = vadd.f32 1.0, %v909_v40  ;;  %v911_v53 = vpop.eup %910 }
  0xad   : > { %v630_v42 = vmul.f32 %v1095_v54, %v594_v39  ;;  %v442_v43 = vpop.f32.mrf.mxu2  ;;  %v579_v52 = vmul.f32 0.5, %v547_v37  ;;  %v555_v0 = vadd.f32 1.0, %v911_v53 }
  0xae   : > { %916 = vtanh.f32 %v492_v38  ;;  %v638_v45 = vmul.f32 %v1095_v54, %v602_v41  ;;  %v443_v46 = vadd.f32 %v1085_v34, %v442_v43  ;;  %v466_v47 = vpop.f32.mrf.mxu3  ;;  %v397_v50 = vpop.f32.mrf.mxu0  ;;  %v586_v2 = vmul.f32 0.5, %v554_v48 }
  0xaf   : > { %679 = vadd.xlane.f32.xlu2 %v630_v42  ;;  %v467_v51 = vadd.f32 %v1085_v34, %v466_v47  ;;  %v398_v55 = vadd.f32 %v1085_v34, %v397_v50  ;;  %918 = vtanh.f32 %v484_v44  ;;  %v615_v1 = vmul.f32 %v1095_v54, %v579_v52 }
  0xb0   : > { %695 = vadd.xlane.f32.xlu1 %v638_v45  ;;  %647 = vadd.xlane.f32.xlu0 %v614_v49  ;;  %v500_v62 = vmul.f32 0.5, %v443_v46  ;;  %v622_v11 = vmul.f32 %v1095_v54, %v586_v2  ;;  %v587_v12 = vmul.f32 0.5, %v555_v0 }
  0xb1   : > { %v421_v56 = vpop.f32.mrf.mxu1  ;;  %v913_v57 = vpop.eup %912  ;;  %v508_v58 = vmul.f32 0.5, %v467_v51  ;;  %v485_v61 = vmul.f32 0.5, %v398_v55 }
  0xb2   : > { %v915_v59 = vpop.eup %914  ;;  %v571_v60 = vadd.f32 1.0, %v913_v57  ;;  %v422_v5 = vadd.f32 %v1085_v34, %v421_v56  ;;  %v623_v26 = vmul.f32 %v1095_v54, %v587_v12 }
  0xb3   : > { %920 = vtanh.f32 %v508_v58  ;;  %v563_v6 = vadd.f32 1.0, %v915_v59 }
  0xb4   : > { %v917_v63 = vpop.eup %916  ;;  %922 = vtanh.f32 %v485_v61  ;;  %v603_v4 = vmul.f32 0.5, %v571_v60  ;;  %v493_v15 = vmul.f32 0.5, %v422_v5 }
  0xb5   : > { %v556_v3 = vadd.f32 1.0, %v917_v63  ;;  %v445_v7 = vpop.f32.mrf.mxu2  ;;  %924 = vtanh.f32 %v500_v62  ;;  %v919_v14 = vpop.eup %918  ;;  %v595_v21 = vmul.f32 0.5, %v563_v6 }
  0xb6   : > { %v639_v8 = vmul.f32 %v1095_v54, %v603_v4  ;;  %v446_v9 = vadd.f32 %v1085_v34, %v445_v7  ;;  %v469_v10 = vpop.f32.mrf.mxu3  ;;  %v400_v13 = vpop.f32.mrf.mxu0  ;;  %v548_v25 = vadd.f32 1.0, %v919_v14 }
  0xb7   : > { %v588_v17 = vmul.f32 0.5, %v556_v3  ;;  %v470_v19 = vadd.f32 %v1085_v34, %v469_v10  ;;  %v401_v22 = vadd.f32 %v1085_v34, %v400_v13  ;;  %v631_v33 = vmul.f32 %v1095_v54, %v595_v21 }
  0xb8   : > { %697 = vadd.xlane.f32.xlu2 %v639_v8  ;;  %649 = vadd.xlane.f32.xlu1 %v615_v1  ;;  %v501_v16 = vmul.f32 0.5, %v446_v9  ;;  %v580_v40 = vmul.f32 0.5, %v548_v25 }
  0xb9   : > { %v424_v18 = vpop.f32.mrf.mxu1  ;;  %v921_v20 = vpop.eup %920  ;;  %663 = vadd.xlane.f32.xlu0 %v622_v11  ;;  %v624_v30 = vmul.f32 %v1095_v54, %v588_v17  ;;  %v509_v31 = vmul.f32 0.5, %v470_v19  ;;  %v486_v35 = vmul.f32 0.5, %v401_v22 }
  0xba   : > { %v425_v23 = vadd.f32 %v1085_v34, %v424_v18  ;;  %v923_v24 = vpop.eup %922  ;;  %926 = vtanh.f32 %v501_v16  ;;  %v572_v32 = vadd.f32 1.0, %v921_v20  ;;  %v616_v55 = vmul.f32 %v1095_v54, %v580_v40 }
  0xbb   : > { %v925_v28 = vpop.eup %924  ;;  %v549_v29 = vadd.f32 1.0, %v923_v24  ;;  %928 = vtanh.f32 %v493_v15 }
  0xbc   : > { %v494_v27 = vmul.f32 0.5, %v425_v23  ;;  %v564_v39 = vadd.f32 1.0, %v925_v28  ;;  %v604_v48 = vmul.f32 0.5, %v572_v32 }
  0xbd   : > { %v448_v36 = vpop.f32.mrf.mxu2  ;;  %v581_v44 = vmul.f32 0.5, %v549_v29 }
  0xbe   : > { %930 = vtanh.f32 %v494_v27  ;;  %v449_v37 = vadd.f32 %v1085_v34, %v448_v36  ;;  %v472_v38 = vpop.f32.mrf.mxu3  ;;  %v403_v41 = vpop.f32.mrf.mxu0  ;;  %v640_v61 = vmul.f32 %v1095_v54, %v604_v48  ;;  %v596_v63 = vmul.f32 0.5, %v564_v39 }
  0xbf   : > { %v473_v42 = vadd.f32 %v1085_v34, %v472_v38  ;;  %932 = vtanh.f32 %v509_v31  ;;  %v404_v46 = vadd.f32 %v1085_v34, %v403_v41  ;;  %v617_v59 = vmul.f32 %v1095_v54, %v581_v44 }
  0xc0   : > { %667 = vadd.xlane.f32.xlu2 %v624_v30  ;;  %665 = vadd.xlane.f32.xlu1 %v623_v26  ;;  %v502_v43 = vmul.f32 0.5, %v449_v37  ;;  %v927_v47 = vpop.eup %926  ;;  %934 = vtanh.f32 %v486_v35  ;;  %v632_v14 = vmul.f32 %v1095_v54, %v596_v63 }
  0xc1   : > { %v427_v45 = vpop.f32.mrf.mxu1  ;;  %681 = vadd.xlane.f32.xlu0 %v631_v33  ;;  %v510_v50 = vmul.f32 0.5, %v473_v42  ;;  %v929_v51 = vpop.eup %928  ;;  %v487_v52 = vmul.f32 0.5, %v404_v46  ;;  %v565_v57 = vadd.f32 1.0, %v927_v47 }
  0xc2   : > { %v428_v49 = vadd.f32 %v1085_v34, %v427_v45  ;;  %936 = vtanh.f32 %v502_v43  ;;  %v557_v60 = vadd.f32 1.0, %v929_v51 }
  0xc3   : > { %938 = vtanh.f32 %v510_v50  ;;  %v597_v9 = vmul.f32 0.5, %v565_v57 }
  0xc4   : > { %v931_v53 = vpop.eup %930  ;;  %v495_v56 = vmul.f32 0.5, %v428_v49  ;;  %940 = vtanh.f32 %v487_v52  ;;  %v589_v15 = vmul.f32 0.5, %v557_v60 }
  0xc5   : > { %v558_v58 = vadd.f32 1.0, %v931_v53  ;;  %v451_v62 = vpop.f32.mrf.mxu2  ;;  %v933_v0 = vpop.eup %932  ;;  %v633_v27 = vmul.f32 %v1095_v54, %v597_v9  ;;  %v1159_v9 = vld [vmem:[#allocation2] ss:$0 sm:$0xff] }
  0xc6   : > { %942 = vtanh.f32 %v495_v56  ;;  %v452_v1 = vadd.f32 %v1085_v34, %v451_v62  ;;  %v475_v2 = vpop.f32.mrf.mxu3  ;;  %v935_v4 = vpop.eup %934  ;;  %v573_v19 = vadd.f32 1.0, %v933_v0  ;;  %v625_v30 = vmul.f32 %v1095_v54, %v589_v15 }
  0xc7   : > { %v590_v3 = vmul.f32 0.5, %v558_v58  ;;  %v406_v5 = vpop.f32.mrf.mxu0  ;;  %v476_v6 = vadd.f32 %v1085_v34, %v475_v2  ;;  %v550_v23 = vadd.f32 1.0, %v935_v4 }
  0xc8   : > { %v937_v7 = vpop.eup %936  ;;  %653 = vadd.xlane.f32.xlu2 %v617_v59  ;;  %651 = vadd.xlane.f32.xlu1 %v616_v55  ;;  %v503_v8 = vmul.f32 0.5, %v452_v1  ;;  %v407_v11 = vadd.f32 %v1085_v34, %v406_v5  ;;  %v605_v43 = vmul.f32 0.5, %v573_v19 }
  0xc9   : > { %v430_v10 = vpop.f32.mrf.mxu1  ;;  %v1138_v12 = vmul.f32 %v1095_v54, %v590_v3  ;;  %v939_v13 = vpop.eup %938  ;;  %699 = vadd.xlane.f32.xlu0 %v640_v61  ;;  %v511_v17 = vmul.f32 0.5, %v476_v6  ;;  %v566_v29 = vadd.f32 1.0, %v937_v7  ;;  %v582_v42 = vmul.f32 0.5, %v550_v23 }
  0xca   : > { %v431_v16 = vadd.f32 %v1085_v34, %v430_v10  ;;  %v941_v18 = vpop.eup %940  ;;  %944 = vtanh.f32 %v503_v8  ;;  %v574_v20 = vadd.f32 1.0, %v939_v13  ;;  %v488_v21 = vmul.f32 0.5, %v407_v11 }
  0xcb   : > { %v551_v24 = vadd.f32 1.0, %v941_v18  ;;  %946 = vtanh.f32 %v511_v17  ;;  %v598_v47 = vmul.f32 0.5, %v566_v29  ;;  %v618_v55 = vmul.f32 %v1095_v54, %v582_v42 }
  0xcc   : > { %v943_v22 = vpop.eup %942  ;;  %v496_v25 = vmul.f32 0.5, %v431_v16  ;;  %948 = vtanh.f32 %v488_v21  ;;  %v606_v28 = vmul.f32 0.5, %v574_v20  ;;  %v641_v56 = vmul.f32 %v1095_v54, %v605_v43 }
  0xcd   : > { %v559_v26 = vadd.f32 1.0, %v943_v22  ;;  %v454_v31 = vpop.f32.mrf.mxu2  ;;  %v583_v32 = vmul.f32 0.5, %v551_v24  ;;  %v634_v58 = vmul.f32 %v1095_v54, %v598_v47 }
  0xce   : > { %950 = vtanh.f32 %v496_v25  ;;  %v455_v33 = vadd.f32 %v1085_v34, %v454_v31  ;;  %v478_v36 = vpop.f32.mrf.mxu3  ;;  %v642_v37 = vmul.f32 %v1095_v54, %v606_v28 }
  0xcf   : > { %v591_v35 = vmul.f32 0.5, %v559_v26  ;;  %v619_v38 = vmul.f32 %v1095_v54, %v583_v32  ;;  %v479_v39 = vadd.f32 %v1085_v34, %v478_v36 }
  0xd0   : > { %v945_v40 = vpop.eup %944  ;;  %685 = vadd.xlane.f32.xlu2 %v633_v27  ;;  %683 = vadd.xlane.f32.xlu1 %v632_v14  ;;  %v504_v41 = vmul.f32 0.5, %v455_v33 }
  0xd1   : > { %v627_v44 = vmul.f32 %v1095_v54, %v591_v35  ;;  %v947_v45 = vpop.eup %946  ;;  %v567_v46 = vadd.f32 1.0, %v945_v40  ;;  %669 = vadd.xlane.f32.xlu0 %v625_v30  ;;  %v512_v48 = vmul.f32 0.5, %v479_v39 }
  0xd2   : > { %v949_v49 = vpop.eup %948  ;;  %952 = vtanh.f32 %v504_v41  ;;  %v575_v50 = vadd.f32 1.0, %v947_v45 }
  0xd3   : > { %v552_v52 = vadd.f32 1.0, %v949_v49  ;;  %954 = vtanh.f32 %v512_v48  ;;  %v599_v34 = vmul.f32 0.5, %v567_v46 }
  0xd4   : > { %v951_v51 = vpop.eup %950  ;;  %v607_v57 = vmul.f32 0.5, %v575_v50 }
  0xd5   : > { %v560_v53 = vadd.f32 1.0, %v951_v51  ;;  %v635_v59 = vmul.f32 %v1095_v54, %v599_v34  ;;  %v584_v60 = vmul.f32 0.5, %v552_v52 }
  0xd6   : > { %v643_v62 = vmul.f32 %v1095_v54, %v607_v57 }
  0xd7   : > { %v592_v61 = vmul.f32 0.5, %v560_v53  ;;  %v620_v63 = vmul.f32 %v1095_v54, %v584_v60 }
  0xd8   : > { %v953_v0 = vpop.eup %952  ;;  %655 = vadd.xlane.f32.xlu2 %v618_v55  ;;  %701 = vadd.xlane.f32.xlu1 %v641_v56 }
  0xd9   : > { %v628_v1 = vmul.f32 %v1095_v54, %v592_v61  ;;  %v955_v2 = vpop.eup %954  ;;  %v568_v3 = vadd.f32 1.0, %v953_v0  ;;  %687 = vadd.xlane.f32.xlu0 %v634_v58 }
  0xda   : > { %v576_v4 = vadd.f32 1.0, %v955_v2 }
  0xdb   : > { %v600_v5 = vmul.f32 0.5, %v568_v3 }
  0xdc   : > { %v608_v6 = vmul.f32 0.5, %v576_v4 }
  0xdd   : > { %v636_v7 = vmul.f32 %v1095_v54, %v600_v5 }
  0xde   : > { %v644_v8 = vmul.f32 %v1095_v54, %v608_v6 }
  0xe0   : > { %673 = vadd.xlane.f32.xlu2 %v627_v44  ;;  %671 = vadd.xlane.f32.xlu1 %v1138_v12 }
  0xe1   : > { %657 = vadd.xlane.f32.xlu0 %v619_v38 }
  0xe8   : > { %691 = vadd.xlane.f32.xlu2 %v636_v7  ;;  %689 = vadd.xlane.f32.xlu1 %v635_v59 }
  0xe9   : > { %675 = vadd.xlane.f32.xlu0 %v628_v1 }
  0xf0   : > { %703 = vadd.xlane.f32.xlu2 %v642_v37  ;;  %659 = vadd.xlane.f32.xlu1 %v620_v63 }
  0xf1   : > { %705 = vadd.xlane.f32.xlu0 %v643_v62 }
  0xf8   : > { %707 = vadd.xlane.f32.xlu1 %v644_v8 }
 0x113   : > { %v646_v54 = vpop.xlane.xlu0 %645 }
 0x114   : > { %v713_v10 = vadd.f32 %v1159_v9, %v646_v54 }
 0x116   : > { %v662_v11 = vpop.xlane.xlu2 %661  ;;  %746 = vst.msk [vmem:[%s1166_s9] sm:$0xff] %vm745_vm2, %v713_v10 }
 0x117   : > { %v721_v12 = vadd.f32 %v1159_v9, %v662_v11 }
 0x119   : > { %754 = vst.msk [vmem:[%s1166_s9 + $0x40] sm:$0xff] %vm745_vm2, %v721_v12 }
 0x11a   : > { %v678_v13 = vpop.xlane.xlu1 %677 }
 0x11b   : > { %v729_v14 = vadd.f32 %v1159_v9, %v678_v13  ;;  %v694_v15 = vpop.xlane.xlu0 %693 }
 0x11c   : > { %v737_v16 = vadd.f32 %v1159_v9, %v694_v15 }
 0x11d   : > { %762 = vst.msk [vmem:[%s1166_s9 + $0x80] sm:$0xff] %vm745_vm2, %v729_v14 }
 0x11e   : > { %770 = vst.msk [vmem:[%s1166_s9 + $0xc0] sm:$0xff] %vm745_vm2, %v737_v16 }
 0x122   : > { %v680_v17 = vpop.xlane.xlu2 %679 }
 0x123   : > { %v696_v18 = vpop.xlane.xlu1 %695  ;;  %v730_v19 = vadd.f32 %v1159_v9, %v680_v17  ;;  %v648_v21 = vpop.xlane.xlu0 %647 }
 0x124   : > { %v738_v20 = vadd.f32 %v1159_v9, %v696_v18  ;;  %v714_v22 = vadd.f32 %v1159_v9, %v648_v21 }
 0x125   : > { %763 = vst.msk [vmem:[%s1166_s9 + $0x88] sm:$0xff] %vm745_vm2, %v730_v19 }
 0x126   : > { %771 = vst.msk [vmem:[%s1166_s9 + $0xc8] sm:$0xff] %vm745_vm2, %v738_v20 }
 0x127   : > { %747 = vst.msk [vmem:[%s1166_s9 + $0x8] sm:$0xff] %vm745_vm2, %v714_v22 }
 0x12b   : > { %v698_v23 = vpop.xlane.xlu2 %697  ;;  %v650_v24 = vpop.xlane.xlu1 %649 }
 0x12c   : > { %v739_v25 = vadd.f32 %v1159_v9, %v698_v23  ;;  %v715_v26 = vadd.f32 %v1159_v9, %v650_v24  ;;  %v664_v27 = vpop.xlane.xlu0 %663 }
 0x12d   : > { %v722_v28 = vadd.f32 %v1159_v9, %v664_v27 }
 0x12e   : > { %772 = vst.msk [vmem:[%s1166_s9 + $0xd0] sm:$0xff] %vm745_vm2, %v739_v25 }
 0x12f   : > { %748 = vst.msk [vmem:[%s1166_s9 + $0x10] sm:$0xff] %vm745_vm2, %v715_v26 }
 0x130   : > { %755 = vst.msk [vmem:[%s1166_s9 + $0x48] sm:$0xff] %vm745_vm2, %v722_v28 }
 0x133   : > { %v668_v29 = vpop.xlane.xlu2 %667  ;;  %v666_v30 = vpop.xlane.xlu1 %665 }
 0x134   : > { %v724_v31 = vadd.f32 %v1159_v9, %v668_v29  ;;  %v723_v32 = vadd.f32 %v1159_v9, %v666_v30  ;;  %v682_v33 = vpop.xlane.xlu0 %681 }
 0x135   : > { %v731_v35 = vadd.f32 %v1159_v9, %v682_v33 }
 0x136   : > { %757 = vst.msk [vmem:[%s1166_s9 + $0x58] sm:$0xff] %vm745_vm2, %v724_v31 }
 0x137   : > { %756 = vst.msk [vmem:[%s1166_s9 + $0x50] sm:$0xff] %vm745_vm2, %v723_v32 }
 0x138   : > { %764 = vst.msk [vmem:[%s1166_s9 + $0x90] sm:$0xff] %vm745_vm2, %v731_v35 }
 0x13b   : > { %v654_v36 = vpop.xlane.xlu2 %653  ;;  %v652_v37 = vpop.xlane.xlu1 %651 }
 0x13c   : > { %v717_v38 = vadd.f32 %v1159_v9, %v654_v36  ;;  %v716_v39 = vadd.f32 %v1159_v9, %v652_v37  ;;  %v700_v40 = vpop.xlane.xlu0 %699 }
 0x13d   : > { %v740_v41 = vadd.f32 %v1159_v9, %v700_v40 }
 0x13e   : > { %750 = vst.msk [vmem:[%s1166_s9 + $0x20] sm:$0xff] %vm745_vm2, %v717_v38 }
 0x13f   : > { %749 = vst.msk [vmem:[%s1166_s9 + $0x18] sm:$0xff] %vm745_vm2, %v716_v39 }
 0x140   : > { %773 = vst.msk [vmem:[%s1166_s9 + $0xd8] sm:$0xff] %vm745_vm2, %v740_v41 }
 0x143   : > { %v686_v42 = vpop.xlane.xlu2 %685  ;;  %v684_v43 = vpop.xlane.xlu1 %683 }
 0x144   : > { %v733_v44 = vadd.f32 %v1159_v9, %v686_v42  ;;  %v732_v45 = vadd.f32 %v1159_v9, %v684_v43  ;;  %v670_v46 = vpop.xlane.xlu0 %669 }
 0x145   : > { %v725_v47 = vadd.f32 %v1159_v9, %v670_v46 }
 0x146   : > { %766 = vst.msk [vmem:[%s1166_s9 + $0xa0] sm:$0xff] %vm745_vm2, %v733_v44 }
 0x147   : > { %765 = vst.msk [vmem:[%s1166_s9 + $0x98] sm:$0xff] %vm745_vm2, %v732_v45 }
 0x148   : > { %758 = vst.msk [vmem:[%s1166_s9 + $0x60] sm:$0xff] %vm745_vm2, %v725_v47 }
 0x14b   : > { %v656_v48 = vpop.xlane.xlu2 %655  ;;  %v702_v49 = vpop.xlane.xlu1 %701 }
 0x14c   : > { %v718_v50 = vadd.f32 %v1159_v9, %v656_v48  ;;  %v741_v51 = vadd.f32 %v1159_v9, %v702_v49  ;;  %v688_v52 = vpop.xlane.xlu0 %687 }
 0x14d   : > { %v734_v34 = vadd.f32 %v1159_v9, %v688_v52 }
 0x14e   : > { %751 = vst.msk [vmem:[%s1166_s9 + $0x28] sm:$0xff] %vm745_vm2, %v718_v50 }
 0x14f   : > { %774 = vst.msk [vmem:[%s1166_s9 + $0xe0] sm:$0xff] %vm745_vm2, %v741_v51 }
 0x150   : > { %767 = vst.msk [vmem:[%s1166_s9 + $0xa8] sm:$0xff] %vm745_vm2, %v734_v34 }
 0x153   : > { %v674_v53 = vpop.xlane.xlu2 %673  ;;  %v672_v55 = vpop.xlane.xlu1 %671 }
 0x154   : > { %v727_v56 = vadd.f32 %v1159_v9, %v674_v53  ;;  %v726_v57 = vadd.f32 %v1159_v9, %v672_v55  ;;  %v658_v58 = vpop.xlane.xlu0 %657 }
 0x155   : > { %v719_v59 = vadd.f32 %v1159_v9, %v658_v58 }
 0x156   : > { %760 = vst.msk [vmem:[%s1166_s9 + $0x70] sm:$0xff] %vm745_vm2, %v727_v56 }
 0x157   : > { %759 = vst.msk [vmem:[%s1166_s9 + $0x68] sm:$0xff] %vm745_vm2, %v726_v57 }
 0x158   : > { %752 = vst.msk [vmem:[%s1166_s9 + $0x30] sm:$0xff] %vm745_vm2, %v719_v59 }
 0x15b   : > { %v692_v60 = vpop.xlane.xlu2 %691  ;;  %v690_v61 = vpop.xlane.xlu1 %689 }
 0x15c   : > { %v736_v62 = vadd.f32 %v1159_v9, %v692_v60  ;;  %v735_v63 = vadd.f32 %v1159_v9, %v690_v61  ;;  %v676_v0 = vpop.xlane.xlu0 %675 }
 0x15d   : > { %v728_v1 = vadd.f32 %v1159_v9, %v676_v0 }
 0x15e   : > { %769 = vst.msk [vmem:[%s1166_s9 + $0xb8] sm:$0xff] %vm745_vm2, %v736_v62 }
 0x15f   : > { %768 = vst.msk [vmem:[%s1166_s9 + $0xb0] sm:$0xff] %vm745_vm2, %v735_v63 }
 0x160   : > { %761 = vst.msk [vmem:[%s1166_s9 + $0x78] sm:$0xff] %vm745_vm2, %v728_v1 }
 0x163   : > { %v704_v2 = vpop.xlane.xlu2 %703  ;;  %v660_v3 = vpop.xlane.xlu1 %659 }
 0x164   : > { %v742_v4 = vadd.f32 %v1159_v9, %v704_v2  ;;  %v720_v5 = vadd.f32 %v1159_v9, %v660_v3  ;;  %v706_v6 = vpop.xlane.xlu0 %705 }
 0x165   : > { %v743_v7 = vadd.f32 %v1159_v9, %v706_v6 }
 0x166   : > { %775 = vst.msk [vmem:[%s1166_s9 + $0xe8] sm:$0xff] %vm745_vm2, %v742_v4 }
 0x167   : > { %753 = vst.msk [vmem:[%s1166_s9 + $0x38] sm:$0xff] %vm745_vm2, %v720_v5 }
 0x168   : > { %776 = vst.msk [vmem:[%s1166_s9 + $0xf0] sm:$0xff] %vm745_vm2, %v743_v7 }
 0x16b   : > { %v708_v8 = vpop.xlane.xlu1 %707 }
 0x16c   : > { %v744_v54 = vadd.f32 %v1159_v9, %v708_v8 }
 0x16e   : > { %777 = vst.msk [vmem:[%s1166_s9 + $0xf8] sm:$0xff] %vm745_vm2, %v744_v54 }
 0x16f PF: > { %s17_s20 = sadd.s32 1, %s962_s20  }
 0x170   : > { %p14_p4 = scmp.ge.s32.totalorder %s17_s20, 4  }
 0x172   :  { %16 = sbr.rel (!%p14_p4) target bundleno = 3 (0x3), region = 70 }

</bundles_post_ra>
